<compile_context>
chip_gen: v6e
topology: v6e:2x2x1
jax: 0.10.0
libtpu: 0.0.40
codegen_flags: <defaults>
</compile_context>

<pallas_src>
import math
import functools

import jax
import jax.numpy as jnp
import numpy as np
from jax.experimental import pallas as pl
from jax.experimental.pallas import tpu as pltpu

_LANES = 128          # boxes per lane row
_MAX_BLOCK_ROWS = 64  # up to 64 * 128 = 8192 boxes per grid step


def _pick_block_rows(r_total: int) -> int:
    """Rows of 128 boxes per grid step (sublane dim; multiple of 8)."""
    if r_total <= 8:
        return r_total                      # single full-extent block
    # Aim for up to 64 rows (8192 boxes) per step, but keep >= 2 grid steps
    # so both v7x TensorCores get work on the "parallel" grid axis.
    r = (r_total // 2) // 8 * 8
    return max(8, min(_MAX_BLOCK_ROWS, r))


def _iou_loss_kernel(pred_ref, tgt_ref, out_ref, *, loss_type):
    # pred_ref / tgt_ref: (4, R, 128) float32 blocks; rows = (cx, cy, w, h).
    px, py, pw, ph = pred_ref[0], pred_ref[1], pred_ref[2], pred_ref[3]
    tx, ty, tw, th = tgt_ref[0], tgt_ref[1], tgt_ref[2], tgt_ref[3]

    p_x1 = px - pw * 0.5
    p_y1 = py - ph * 0.5
    p_x2 = px + pw * 0.5
    p_y2 = py + ph * 0.5
    t_x1 = tx - tw * 0.5
    t_y1 = ty - th * 0.5
    t_x2 = tx + tw * 0.5
    t_y2 = ty + th * 0.5

    # intersection top-left / bottom-right
    tl_x = jnp.maximum(p_x1, t_x1)
    tl_y = jnp.maximum(p_y1, t_y1)
    br_x = jnp.minimum(p_x2, t_x2)
    br_y = jnp.minimum(p_y2, t_y2)

    area_p = pw * ph
    area_g = tw * th

    en = ((tl_x < br_x) & (tl_y < br_y)).astype(jnp.float32)
    area_i = (br_x - tl_x) * (br_y - tl_y) * en
    area_u = area_p + area_g - area_i
    iou = area_i * pl.reciprocal(area_u + 1e-16, approx=True)

    # enclosing box extents
    cover_x = jnp.maximum(p_x2, t_x2) - jnp.minimum(p_x1, t_x1)
    cover_y = jnp.maximum(p_y2, t_y2) - jnp.minimum(p_y1, t_y1)

    if loss_type == "iou":
        loss = 1.0 - iou * iou
    elif loss_type == "giou":
        area_c = cover_x * cover_y
        giou = iou - (area_c - area_u) * pl.reciprocal(
            jnp.maximum(area_c, 1e-16), approx=True)
        loss = 1.0 - jnp.clip(giou, -1.0, 1.0)
    elif loss_type == "ciou":
        inter_diag = (tx - px) ** 2 + (ty - py) ** 2
        outer_diag = (jnp.maximum(cover_x, 0.0) ** 2
                      + jnp.maximum(cover_y, 0.0) ** 2)
        # TODO(synk): the two arctans/box share the single EUP slot; if EUP
        # ever binds, switch to a single-arctan identity on
        # (tw*ph - pw*th)/(tw*pw + th*ph) with range handling.
        arctan = jnp.arctan(tw / th) - jnp.arctan(pw / ph)
        v = (4.0 / math.pi ** 2) * arctan * arctan
        s = (iou > 0.5).astype(jnp.float32)   # no_grad only affects backward
        alpha = s * v * pl.reciprocal(1.0 - iou + v, approx=True)
        # note: like the PyTorch reference, degenerate boxes (outer_diag == 0
        # or iou == 1 with v == 0) yield NaN; such lanes never reach the
        # reduction because it happens after the [:n] slice in the wrapper.
        ciou = iou - inter_diag * pl.reciprocal(outer_diag, approx=True) + alpha * v
        loss = 1.0 - jnp.clip(ciou, -1.0, 1.0)
    else:
        raise ValueError(f"unknown loss_type {loss_type!r}")

    out_ref[...] = loss.astype(out_ref.dtype)


def iou_loss(pred, target, *, reduction="none", loss_type="iou"):
    """JAX/Pallas equivalent of IOUloss.forward."""
    assert pred.shape[0] == target.shape[0]
    pred = pred.reshape(-1, 4).astype(jnp.float32)
    target = target.reshape(-1, 4).astype(jnp.float32)
    n = pred.shape[0]

    r_total = pl.cdiv(n, _LANES)
    n_pad = r_total * _LANES
    if n_pad != n:
        # <= 127 dummy boxes; pred/target pads differ so ciou stays finite.
        pred = jnp.pad(pred, ((0, n_pad - n), (0, 0)), constant_values=1.0)
        target = jnp.pad(target, ((0, n_pad - n), (0, 0)), constant_values=2.0)

    # Sublane/lane-dense SoA layout: (4, n_pad // 128, 128).
    pred_t = pred.reshape(r_total, _LANES, 4).transpose(2, 0, 1)
    tgt_t = target.reshape(r_total, _LANES, 4).transpose(2, 0, 1)

    r_blk = _pick_block_rows(r_total)
    grid = (pl.cdiv(r_total, r_blk),)

    kernel = functools.partial(_iou_loss_kernel, loss_type=loss_type)
    out = pl.pallas_call(
        kernel,
        out_shape=jax.ShapeDtypeStruct((r_total, _LANES), jnp.float32),
        grid=grid,
        in_specs=[
            pl.BlockSpec((4, r_blk, _LANES), lambda i: (0, i, 0)),
            pl.BlockSpec((4, r_blk, _LANES), lambda i: (0, i, 0)),
        ],
        out_specs=pl.BlockSpec((r_blk, _LANES), lambda i: (i, 0)),
        compiler_params=pltpu.CompilerParams(
            dimension_semantics=("parallel",)),
    )(pred_t, tgt_t)

    loss = out.reshape(-1)[:n]
    # reduction is a trivial final step, done in plain JAX glue (keeps any
    # padded / ragged tail lanes out of mean/sum).
    if reduction == "mean":
        loss = loss.mean()
    elif reduction == "sum":
        loss = loss.sum()
    return loss


def _iou_loss_ref(pred, target, *, reduction="none", loss_type="iou"):
    """Pure-JAX reference mirroring the PyTorch forward, for validation."""
    pred = pred.reshape(-1, 4).astype(jnp.float32)
    target = target.reshape(-1, 4).astype(jnp.float32)
    tl = jnp.maximum(pred[:, :2] - pred[:, 2:] / 2, target[:, :2] - target[:, 2:] / 2)
    br = jnp.minimum(pred[:, :2] + pred[:, 2:] / 2, target[:, :2] + target[:, 2:] / 2)
    area_p = jnp.prod(pred[:, 2:], axis=1)
    area_g = jnp.prod(target[:, 2:], axis=1)
    en = jnp.prod((tl < br).astype(jnp.float32), axis=1)
    area_i = jnp.prod(br - tl, axis=1) * en
    area_u = area_p + area_g - area_i
    iou = area_i / (area_u + 1e-16)
    c_tl = jnp.minimum(pred[:, :2] - pred[:, 2:] / 2, target[:, :2] - target[:, 2:] / 2)
    c_br = jnp.maximum(pred[:, :2] + pred[:, 2:] / 2, target[:, :2] + target[:, 2:] / 2)
    cover = c_br - c_tl
    if loss_type == "iou":
        loss = 1 - iou ** 2
    elif loss_type == "giou":
        area_c = jnp.prod(cover, axis=1)
        giou = iou - (area_c - area_u) / jnp.maximum(area_c, 1e-16)
        loss = 1 - jnp.clip(giou, -1.0, 1.0)
    elif loss_type == "ciou":
        inter_diag = (target[:, 0] - pred[:, 0]) ** 2 + (target[:, 1] - pred[:, 1]) ** 2
        outer_diag = jnp.maximum(cover[:, 0], 0) ** 2 + jnp.maximum(cover[:, 1], 0) ** 2
        arctan = jnp.arctan(target[:, 2] / target[:, 3]) - jnp.arctan(pred[:, 2] / pred[:, 3])
        v = 4 / math.pi ** 2 * arctan ** 2
        s = (iou > 0.5).astype(jnp.float32)
        alpha = s * v / (1 - iou + v)
        ciou = jnp.clip(iou - inter_diag / outer_diag + alpha * v, -1.0, 1.0)
        loss = 1 - ciou
    if reduction == "mean":
        loss = loss.mean()
    elif reduction == "sum":
        loss = loss.sum()
    return loss


if __name__ == "__main__":
    key = jax.random.PRNGKey(0)
    ok = True
    # small sizes that exercise: exact multiple of 128, a <128 ragged tail
    # (host pad path), and a 2-step grid with a ragged last block.
    for n in (256, 333, 1500):
        k1, k2, k3, k4 = jax.random.split(jax.random.fold_in(key, n), 4)
        # boxes in (cx, cy, w, h) format, positive sizes
        pred = jnp.concatenate(
            [jax.random.uniform(k1, (n, 2), jnp.float32) * 8.0,
             jax.random.uniform(k2, (n, 2), jnp.float32) * 2.0 + 0.5], axis=1)
        target = jnp.concatenate(
            [jax.random.uniform(k3, (n, 2), jnp.float32) * 8.0,
             jax.random.uniform(k4, (n, 2), jnp.float32) * 2.0 + 0.5], axis=1)

        for loss_type in ("iou", "giou", "ciou"):
            for reduction in ("none", "mean", "sum"):
                out = jax.block_until_ready(
                    iou_loss(pred, target, reduction=reduction, loss_type=loss_type))
                ref = _iou_loss_ref(pred, target, reduction=reduction, loss_type=loss_type)
                # tolerance slightly loosened vs f32 ulp because the kernel
                # uses EUP approx reciprocals instead of exact divides.
                if not np.allclose(np.asarray(out), np.asarray(ref),
                                   rtol=5e-3, atol=5e-3):
                    ok = False
                    print(f"MISMATCH n={n} loss_type={loss_type} "
                          f"reduction={reduction}")

    if ok:
        print("KERNEL_OK")
</pallas_src>

<mosaic_0001>
module attributes {stable_mosaic.version = 11 : i64} {
  func.func @_iou_loss_kernel(%arg0: i32, %arg1: memref<4x2x128xf32, #tpu.memory_space<vmem>>, %arg2: memref<4x2x128xf32, #tpu.memory_space<vmem>>, %arg3: memref<2x128xf32, #tpu.memory_space<vmem>>) attributes {dimension_semantics = [#tpu.dimension_semantics<parallel>], iteration_bounds = array<i64: 1>, scalar_prefetch = 0 : i64, scratch_operands = 0 : i64, tpu.core_type = #tpu.core_type<tc>, window_params = [{transform_indices = @transform_0, window_bounds = array<i64: 4, 2, 128>}, {transform_indices = @transform_1, window_bounds = array<i64: 4, 2, 128>}, {transform_indices = @transform_2, window_bounds = array<i64: 2, 128>}]} {
    %c0 = arith.constant 0 : index
    %c0_0 = arith.constant 0 : index
    %c0_1 = arith.constant 0 : index
    %0 = vector.load %arg1[%c0, %c0_0, %c0_1] : memref<4x2x128xf32, #tpu.memory_space<vmem>>, vector<1x2x128xf32>
    %1 = vector.shape_cast %0 : vector<1x2x128xf32> to vector<2x128xf32>
    %c1 = arith.constant 1 : index
    %c0_2 = arith.constant 0 : index
    %c0_3 = arith.constant 0 : index
    %2 = vector.load %arg1[%c1, %c0_2, %c0_3] : memref<4x2x128xf32, #tpu.memory_space<vmem>>, vector<1x2x128xf32>
    %3 = vector.shape_cast %2 : vector<1x2x128xf32> to vector<2x128xf32>
    %c2 = arith.constant 2 : index
    %c0_4 = arith.constant 0 : index
    %c0_5 = arith.constant 0 : index
    %4 = vector.load %arg1[%c2, %c0_4, %c0_5] : memref<4x2x128xf32, #tpu.memory_space<vmem>>, vector<1x2x128xf32>
    %5 = vector.shape_cast %4 : vector<1x2x128xf32> to vector<2x128xf32>
    %c3 = arith.constant 3 : index
    %c0_6 = arith.constant 0 : index
    %c0_7 = arith.constant 0 : index
    %6 = vector.load %arg1[%c3, %c0_6, %c0_7] : memref<4x2x128xf32, #tpu.memory_space<vmem>>, vector<1x2x128xf32>
    %7 = vector.shape_cast %6 : vector<1x2x128xf32> to vector<2x128xf32>
    %c0_8 = arith.constant 0 : index
    %c0_9 = arith.constant 0 : index
    %c0_10 = arith.constant 0 : index
    %8 = vector.load %arg2[%c0_8, %c0_9, %c0_10] : memref<4x2x128xf32, #tpu.memory_space<vmem>>, vector<1x2x128xf32>
    %9 = vector.shape_cast %8 : vector<1x2x128xf32> to vector<2x128xf32>
    %c1_11 = arith.constant 1 : index
    %c0_12 = arith.constant 0 : index
    %c0_13 = arith.constant 0 : index
    %10 = vector.load %arg2[%c1_11, %c0_12, %c0_13] : memref<4x2x128xf32, #tpu.memory_space<vmem>>, vector<1x2x128xf32>
    %11 = vector.shape_cast %10 : vector<1x2x128xf32> to vector<2x128xf32>
    %c2_14 = arith.constant 2 : index
    %c0_15 = arith.constant 0 : index
    %c0_16 = arith.constant 0 : index
    %12 = vector.load %arg2[%c2_14, %c0_15, %c0_16] : memref<4x2x128xf32, #tpu.memory_space<vmem>>, vector<1x2x128xf32>
    %13 = vector.shape_cast %12 : vector<1x2x128xf32> to vector<2x128xf32>
    %c3_17 = arith.constant 3 : index
    %c0_18 = arith.constant 0 : index
    %c0_19 = arith.constant 0 : index
    %14 = vector.load %arg2[%c3_17, %c0_18, %c0_19] : memref<4x2x128xf32, #tpu.memory_space<vmem>>, vector<1x2x128xf32>
    %15 = vector.shape_cast %14 : vector<1x2x128xf32> to vector<2x128xf32>
    %cst = arith.constant 5.000000e-01 : f32
    %16 = vector.broadcast %cst : f32 to vector<2x128xf32>
    %17 = arith.mulf %5, %16 : vector<2x128xf32>
    %18 = arith.subf %1, %17 : vector<2x128xf32>
    %cst_20 = arith.constant 5.000000e-01 : f32
    %19 = vector.broadcast %cst_20 : f32 to vector<2x128xf32>
    %20 = arith.mulf %7, %19 : vector<2x128xf32>
    %21 = arith.subf %3, %20 : vector<2x128xf32>
    %cst_21 = arith.constant 5.000000e-01 : f32
    %22 = vector.broadcast %cst_21 : f32 to vector<2x128xf32>
    %23 = arith.mulf %5, %22 : vector<2x128xf32>
    %24 = arith.addf %1, %23 : vector<2x128xf32>
    %cst_22 = arith.constant 5.000000e-01 : f32
    %25 = vector.broadcast %cst_22 : f32 to vector<2x128xf32>
    %26 = arith.mulf %7, %25 : vector<2x128xf32>
    %27 = arith.addf %3, %26 : vector<2x128xf32>
    %cst_23 = arith.constant 5.000000e-01 : f32
    %28 = vector.broadcast %cst_23 : f32 to vector<2x128xf32>
    %29 = arith.mulf %13, %28 : vector<2x128xf32>
    %30 = arith.subf %9, %29 : vector<2x128xf32>
    %cst_24 = arith.constant 5.000000e-01 : f32
    %31 = vector.broadcast %cst_24 : f32 to vector<2x128xf32>
    %32 = arith.mulf %15, %31 : vector<2x128xf32>
    %33 = arith.subf %11, %32 : vector<2x128xf32>
    %cst_25 = arith.constant 5.000000e-01 : f32
    %34 = vector.broadcast %cst_25 : f32 to vector<2x128xf32>
    %35 = arith.mulf %13, %34 : vector<2x128xf32>
    %36 = arith.addf %9, %35 : vector<2x128xf32>
    %cst_26 = arith.constant 5.000000e-01 : f32
    %37 = vector.broadcast %cst_26 : f32 to vector<2x128xf32>
    %38 = arith.mulf %15, %37 : vector<2x128xf32>
    %39 = arith.addf %11, %38 : vector<2x128xf32>
    %40 = arith.maximumf %18, %30 : vector<2x128xf32>
    %41 = arith.maximumf %21, %33 : vector<2x128xf32>
    %42 = arith.minimumf %24, %36 : vector<2x128xf32>
    %43 = arith.minimumf %27, %39 : vector<2x128xf32>
    %44 = arith.mulf %5, %7 : vector<2x128xf32>
    %45 = arith.mulf %13, %15 : vector<2x128xf32>
    %46 = arith.cmpf olt, %40, %42 : vector<2x128xf32>
    %47 = arith.cmpf olt, %41, %43 : vector<2x128xf32>
    %48 = arith.andi %46, %47 : vector<2x128xi1>
    %49 = arith.extui %48 : vector<2x128xi1> to vector<2x128xi32>
    %50 = arith.sitofp %49 : vector<2x128xi32> to vector<2x128xf32>
    %51 = arith.subf %42, %40 : vector<2x128xf32>
    %52 = arith.subf %43, %41 : vector<2x128xf32>
    %53 = arith.mulf %51, %52 : vector<2x128xf32>
    %54 = arith.mulf %53, %50 : vector<2x128xf32>
    %55 = arith.addf %44, %45 : vector<2x128xf32>
    %56 = arith.subf %55, %54 : vector<2x128xf32>
    %cst_27 = arith.constant 1.000000e-16 : f32
    %57 = vector.broadcast %cst_27 : f32 to vector<2x128xf32>
    %58 = arith.addf %56, %57 : vector<2x128xf32>
    %59 = tpu.reciprocal %58 {approx = true} : vector<2x128xf32> -> vector<2x128xf32>
    %60 = arith.mulf %54, %59 : vector<2x128xf32>
    %61 = arith.mulf %60, %60 : vector<2x128xf32>
    %cst_28 = arith.constant 1.000000e+00 : f32
    %62 = vector.broadcast %cst_28 : f32 to vector<2x128xf32>
    %63 = arith.subf %62, %61 : vector<2x128xf32>
    %c0_29 = arith.constant 0 : index
    %c0_30 = arith.constant 0 : index
    %64 = vector.load %arg3[%c0_29, %c0_30] : memref<2x128xf32, #tpu.memory_space<vmem>>, vector<2x128xf32>
    tpu.vector_store %arg3[%c0_29, %c0_30], %63 {strides = array<i32>} : memref<2x128xf32, #tpu.memory_space<vmem>>, vector<2x128xf32>,
    return
  }
  func.func @transform_0(%arg0: i32) -> (i32, i32, i32) {
    %c0_i32 = arith.constant 0 : i32
    %c0_i32_0 = arith.constant 0 : i32
    %c0_i32_1 = arith.constant 0 : i32
    return %c0_i32, %arg0, %c0_i32_0 : i32, i32, i32
  }
  func.func @transform_1(%arg0: i32) -> (i32, i32, i32) {
    %c0_i32 = arith.constant 0 : i32
    %c0_i32_0 = arith.constant 0 : i32
    %c0_i32_1 = arith.constant 0 : i32
    return %c0_i32, %arg0, %c0_i32_0 : i32, i32, i32
  }
  func.func @transform_2(%arg0: i32) -> (i32, i32) {
    %c0_i32 = arith.constant 0 : i32
    %c0_i32_0 = arith.constant 0 : i32
    return %arg0, %c0_i32 : i32, i32
  }
}

</mosaic_0001>

<bundles_post_ra>
// kernel: tpu_custom_call.1
= control target key start
LH: loop header
LB: loop body
LE: loop exit
PB: predicated region body
PF: predicated region fallthrough
CT: control target
= control target key end

     0   :  { %7 = vsyncpa [#allocation3], 0  ;;  %s210_s0 = inlined_call_operand.hbm [shape: f32[4,2,128], index: 0, kind: input, shape index: {}]   ;;  %s211_s1 = inlined_call_operand.hbm [shape: f32[4,2,128], index: 1, kind: input, shape index: {}]   ;;  %s212_s2 = inlined_call_operand.hbm [shape: f32[2,128], index: 2, kind: output, shape index: {}]  }
   0x1   :  { %8 = vsyncpa [#allocation6], 0 }
   0x2   :  { %9 = vsyncpa [#allocation4], 0  ;;  %s180_s9 = smov [#allocation2]  }
   0x3   :  { %s15_s10 = sshll.u32 %s180_s9, 4  ;;  %s16_s10 = int_to_ptr.vmem [resolvable:$true] %s15_s10 }
   0x4   :  { %s122_s11 = scalar_lea.vmem %s16_s10, 128  ;;  %p127_p1 = scmp.lt.s32.totalorder %s16_s10, %s16_s10 }
   0x5   :  { %p123_p0 = scmp.ne.s32.totalorder %s16_s10, %s122_s11  ;;  %p128_p2 = scmp.lt.s32.totalorder %s122_s11, %s122_s11 }
   0x7   :  { %p129_p3 = por %p128_p2, %p127_p1 }
   0x9   :  { %p130_p4 = pnand %p129_p3, %p123_p0 }
   0xb   :  { %133 = shalt.err (!%p130_p4)
}
   0xc   :  { %s181_s12 = smov 32   ;;  %s182_s13 = smov 2  }
   0xd   :  { %21 = dma.hbm_to_vmem [thread:$0]  %s210_s0, 128, %s16_s10, [#allocation3], %s181_s12, %s181_s12, %s182_s13  }
   0xe   :  { %s183_s16 = smov [#allocation5]  }
   0xf   :  { %s27_s17 = sshll.u32 %s183_s16, 4  ;;  %s28_s17 = int_to_ptr.vmem [resolvable:$true] %s27_s17 }
  0x10   :  { %s142_s18 = scalar_lea.vmem %s28_s17, 128  ;;  %p147_p6 = scmp.lt.s32.totalorder %s28_s17, %s28_s17 }
  0x11   :  { %p143_p5 = scmp.ne.s32.totalorder %s28_s17, %s142_s18  ;;  %p148_p7 = scmp.lt.s32.totalorder %s142_s18, %s142_s18 }
  0x13   :  { %p149_p8 = por %p148_p7, %p147_p6 }
  0x15   :  { %p150_p9 = pnand %p149_p8, %p143_p5 }
  0x17   :  { %153 = shalt.err (!%p150_p9)
}
  0x18   :  { %33 = dma.hbm_to_vmem [thread:$0]  %s211_s1, 128, %s28_s17, [#allocation6], %s181_s12, %s181_s12, %s182_s13  }
  0x19   :  { %174 = dma.done.wait [#allocation3], 128  }
  0x1a   :  { %175 = vsyncadd [#allocation3], 4294967168 }
  0x1b   :  { %176 = dma.done.wait [#allocation6], 128  }
  0x1c   :  { %177 = vsyncadd [#allocation6], 4294967168  ;;  %v40_v0 = vld [vmem:[#allocation2] sm:$0x3]  ;;  %v42_v1 = vld [vmem:[#allocation2 + $0x2] sm:$0x3] }
  0x1d   :  { %v44_v2 = vld [vmem:[#allocation2 + $0x4] sm:$0x3]  ;;  %v46_v3 = vld [vmem:[#allocation2 + $0x6] sm:$0x3]  ;;  %v47_v4 = vld [vmem:[#allocation5] sm:$0x3] }
  0x1e   :  { %v49_v5 = vld [vmem:[#allocation5 + $0x2] sm:$0x3]  ;;  %v51_v6 = vld [vmem:[#allocation5 + $0x4] sm:$0x3]  ;;  %v53_v7 = vld [vmem:[#allocation5 + $0x6] sm:$0x3]  ;;  %v70_v20 = vmul.f32 %v46_v3, %v44_v2 }
  0x1f   :  { %v54_v8 = vmul.f32 0.5, %v44_v2  ;;  %v56_v9 = vmul.f32 0.5, %v46_v3  ;;  %v60_v10 = vmul.f32 0.5, %v51_v6  ;;  %v62_v11 = vmul.f32 0.5, %v53_v7  ;;  %s185_s0 = smov [#allocation7]  }
  0x20   :  { %v71_v21 = vmul.f32 %v53_v7, %v51_v6  ;;  %v184_v28 = vmov 0.0   ;;  %s95_s1 = sshll.u32 %s185_s0, 4  ;;  %s96_s1 = int_to_ptr.vmem [resolvable:$true] %s95_s1 }
  0x21   :  { %v55_v12 = vsub.f32 %v40_v0, %v54_v8  ;;  %v57_v13 = vsub.f32 %v42_v1, %v56_v9  ;;  %v58_v14 = vadd.f32 %v54_v8, %v40_v0  ;;  %v59_v15 = vadd.f32 %v56_v9, %v42_v1  ;;  %s154_s21 = scalar_lea.vmem %s96_s1, 32  ;;  %p159_p11 = scmp.lt.s32.totalorder %s96_s1, %s96_s1 }
  0x22   :  { %v61_v16 = vsub.f32 %v47_v4, %v60_v10  ;;  %v63_v17 = vsub.f32 %v49_v5, %v62_v11  ;;  %v64_v18 = vadd.f32 %v60_v10, %v47_v4  ;;  %v65_v19 = vadd.f32 %v62_v11, %v49_v5  ;;  %p155_p10 = scmp.ne.s32.totalorder %s96_s1, %s154_s21  ;;  %p160_p12 = scmp.lt.s32.totalorder %s154_s21, %s154_s21 }
  0x23   :  { %v81_v31 = vadd.f32 %v71_v21, %v70_v20 }
  0x24   :  { %v66_v22 = vmax.f32 %v55_v12, %v61_v16  ;;  %v67_v23 = vmax.f32 %v57_v13, %v63_v17  ;;  %v68_v24 = vmin.f32 %v58_v14, %v64_v18  ;;  %v69_v25 = vmin.f32 %v59_v15, %v65_v19  ;;  %p161_p13 = por %p160_p12, %p159_p11 }
  0x26   :  { %vm72_vm0 = vcmp.lt.f32.partialorder %v66_v22, %v68_v24  ;;  %vm73_vm1 = vcmp.lt.f32.partialorder %v67_v23, %v69_v25  ;;  %v77_v26 = vsub.f32 %v68_v24, %v66_v22  ;;  %v78_v27 = vsub.f32 %v69_v25, %v67_v23  ;;  %p162_p0 = pnand %p161_p13, %p155_p10 }
  0x27   :  { %vm74_vm2 = vmand %vm72_vm0, %vm73_vm1 }
  0x28   :  { %v105_v29 = vsel %vm74_vm2, 1.0, %v184_v28  ;;  %v79_v30 = vmul.f32 %v78_v27, %v77_v26 }
  0x2a   :  { %v80_v32 = vmul.f32 %v105_v29, %v79_v30 }
  0x2c   :  { %v82_v33 = vsub.f32 %v81_v31, %v80_v32 }
  0x2e   :  { %v83_v34 = vadd.f32 1e-16, %v82_v33 }
  0x30   :  { %112 = vrcp.f32 %v83_v34 }
  0x3d   :  { %v113_v35 = vpop.eup %112 }
  0x3e   :  { %v85_v36 = vmul.f32 %v113_v35, %v80_v32 }
  0x40   :  { %v86_v37 = vmul.f32 %v85_v36, %v85_v36 }
  0x42   :  { %v87_v38 = vsub.f32 1.0, %v86_v37 }
  0x44   :  { %88 = vst [vmem:[#allocation7] sm:$0x3] %v87_v38 }
  0x45   :  { %165 = shalt.err (!%p162_p0)
}
  0x46   :  { %98 = dma.vmem_to_hbm [thread:$0]  %s96_s1, 32, %s212_s2, [#allocation4]  }
  0x47   :  { %178 = dma.done.wait [#allocation4], 32  }
  0x48   :  { %179 = vsyncadd [#allocation4], 4294967264 }
  0x49   :  { %102 = vsyncpa [#allocation3], 1 }
  0x4a   :  { %103 = vsyncpa [#allocation6], 1 }
  0x4b   :  { %104 = vsyncpa [#allocation4], 1 }

</bundles_post_ra>
